<compile_context>
chip_gen: v6e
topology: v6e:2x2x1
jax: 0.10.0
libtpu: 0.0.40
codegen_flags: <defaults>
</compile_context>

<pallas_src>
import jax
import jax.numpy as jnp
from jax import lax
from jax.experimental import pallas as pl
from jax.experimental.pallas import tpu as pltpu


def _round_up(x: int, m: int) -> int:
    return (x + m - 1) // m * m


def _tpu_vmem_capacity_bytes() -> int:
    """Per-core VMEM capacity; conservative fallback = one v7x TensorCore."""
    try:
        return int(pltpu.get_tpu_info().vmem_capacity_bytes)
    except Exception:
        return 64 << 20


def _vmem_limit_bytes(TB: int, C: int, logits_itemsize: int, sup_itemsize: int,
                      cap: int) -> int:
    est = (2 * TB * C * logits_itemsize        # double-buffered logits tiles
           + 2 * TB * 4                        # double-buffered target tiles
           + C * C * sup_itemsize              # supervise (single-buffered)
           + 2 * (C * C * 4 + C * 4 + 8)       # upd / cnt / loss output blocks
           + 8 * TB * C * 4                    # in-kernel f32/bf16 temporaries
           + (4 << 20))                        # Mosaic internal scratch headroom
    return int(max(16 << 20, min(est, int(0.85 * cap))))


def _ols_kernel(alpha_ref, tgt_ref, logits_ref, sup_ref,
                loss_ref, upd_ref, cnt_ref, loss_acc):
    i = pl.program_id(1)          # batch-tile step within this core slab

    # Zero the resident accumulators at the start of each core slab.
    @pl.when(i == 0)
    def _init():
        loss_acc[...] = jnp.zeros_like(loss_acc)
        upd_ref[...] = jnp.zeros_like(upd_ref)
        cnt_ref[...] = jnp.zeros_like(cnt_ref)

    alpha = alpha_ref[0, 0]                           # SMEM scalar
    x = logits_ref[...].astype(jnp.float32)           # (TB, C)
    tgt = tgt_ref[...]                                # (TB, 1) int32 (-1 = pad row)
    sup = sup_ref[...]                                # (C, C), matmul dtype (bf16)
    mm_dtype = sup.dtype

    TB, C = x.shape
    col = lax.broadcasted_iota(jnp.int32, (TB, C), 1)
    tgt_match = col == tgt                            # padded rows -> all False
    valid = (tgt >= 0).astype(jnp.float32)            # (TB, 1)

    # ---- softmax statistics (single exp pass; divide on EUP) ----
    m = jnp.max(x, axis=-1, keepdims=True)            # (TB, 1)
    exp_z = jnp.exp(x - m)
    sum_exp = jnp.sum(exp_z, axis=-1, keepdims=True)
    lse = m + jnp.log(sum_exp)                        # logsumexp, (TB, 1)
    inv_sum = pl.reciprocal(sum_exp, approx=True)
    probs = (exp_z * inv_sum).astype(mm_dtype)        # (TB, C) bf16 for the MXU

    # Target logit: reused for both the hard loss and the correctness test.
    x_tgt = jnp.sum(jnp.where(tgt_match, x, 0.0), axis=-1, keepdims=True)  # (TB,1)

    # ---- soft loss: true_dist[b,c] = supervise[c, target[b]] via bf16 MXU ----
    onehot = tgt_match.astype(mm_dtype)               # exact 0/1 in bf16
    true_dist = lax.dot_general(
        onehot, sup,
        dimension_numbers=(((1,), (1,)), ((), ())),
        preferred_element_type=jnp.float32)           # (TB, C) f32 accumulate
    # TODO(synk): for very large C (>= ~2048 on v7x) tile the class axis of
    # supervise/upd with an extra grid dimension, or gather supervise rows via
    # scalar-prefetched targets instead of the one-hot matmul.

    nlp = lse - x                                     # -log_softmax(x), (TB, C)
    hard = valid * (lse - x_tgt)                      # -logp[b, tgt], padded rows 0
    soft = jnp.sum(true_dist * nlp, axis=-1, keepdims=True)   # padded rows 0
    per_sample = alpha * hard + (1.0 - alpha) * soft           # (TB, 1)
    loss_acc[...] += jnp.sum(per_sample, axis=0, keepdims=True)

    # ---- step(): buffer update deltas ----
    # "Correct" iff the target logit attains the row max. Matches torch argmax
    # except when a lower-index class exactly ties the target logit (measure
    # zero for float logits). Padded rows have zero one-hot -> no effect.
    correct = (x_tgt >= m).astype(mm_dtype)           # (TB, 1)
    sel = onehot * correct                            # (TB, C), exact 0/1 in bf16

    # upd[c, j] += sum_b probs[b, c] * sel[b, j]  (contract over batch, bf16 MXU)
    upd_ref[...] += lax.dot_general(
        probs, sel,
        dimension_numbers=(((0,), (0,)), ((), ())),
        preferred_element_type=jnp.float32)           # (C, C)
    cnt_ref[...] += jnp.sum(sel.astype(jnp.float32), axis=0, keepdims=True)

    # Write the loss output once per core slab (last batch step).
    @pl.when(i == pl.num_programs(1) - 1)
    def _finalize():
        loss_ref[...] = loss_acc[...]


def online_label_smoothing_forward(logits, target, supervise, alpha, *,
                                   block_b=None, num_core_splits=2,
                                   matmul_dtype=jnp.bfloat16):
    """Returns (loss, update_delta, idx_count_delta)."""
    B, C = logits.shape
    NC = max(1, int(num_core_splits))
    cap = _tpu_vmem_capacity_bytes()

    if block_b is None:
        # Bigger tiles on 128 MiB VMEM parts (v5e/v6e); conservative on v7x.
        block_b = 512 if (cap >= (96 << 20) and C <= 2048) else 256

    # Batch tile: multiple of 8 sublanes, capped at block_b.
    TB = _round_up(min(block_b, _round_up(B, 8)), 8)
    steps_total = -(-B // TB)
    steps_pc = -(-steps_total // NC)       # batch tiles per core slab
    Bp = NC * steps_pc * TB

    target = target.astype(jnp.int32)
    if Bp != B:
        # Pad rows get target=-1 -> zero one-hot -> no loss / upd / cnt effect.
        logits_p = jnp.pad(logits, ((0, Bp - B), (0, 0)))
        target_p = jnp.pad(target, (0, Bp - B), constant_values=-1)
    else:
        logits_p, target_p = logits, target
    tgt2d = target_p.reshape(Bp, 1)
    alpha_arr = jnp.asarray(alpha, dtype=jnp.float32).reshape(1, 1)
    sup_mm = supervise.astype(matmul_dtype)   # cast once; bf16 halves residency/DMA

    vmem_limit = _vmem_limit_bytes(TB, C, logits_p.dtype.itemsize,
                                   sup_mm.dtype.itemsize, cap)

    loss_parts, upd_parts, cnt_parts = pl.pallas_call(
        _ols_kernel,
        grid=(NC, steps_pc),
        in_specs=[
            pl.BlockSpec(memory_space=pltpu.MemorySpace.SMEM),              # alpha
            pl.BlockSpec((TB, 1), lambda c, i: (c * steps_pc + i, 0)),      # targets
            pl.BlockSpec((TB, C), lambda c, i: (c * steps_pc + i, 0)),      # logits
            pl.BlockSpec((C, C), lambda c, i: (0, 0),
                         pipeline_mode=pl.Buffered(1)),                     # supervise
        ],
        out_specs=[
            pl.BlockSpec((None, 1, 1), lambda c, i: (c, 0, 0)),   # per-core loss sum
            pl.BlockSpec((None, C, C), lambda c, i: (c, 0, 0)),   # per-core upd delta
            pl.BlockSpec((None, 1, C), lambda c, i: (c, 0, 0)),   # per-core cnt delta
        ],
        out_shape=[
            jax.ShapeDtypeStruct((NC, 1, 1), jnp.float32),
            jax.ShapeDtypeStruct((NC, C, C), jnp.float32),
            jax.ShapeDtypeStruct((NC, 1, C), jnp.float32),
        ],
        scratch_shapes=[pltpu.VMEM((1, 1), jnp.float32)],         # loss accumulator
        compiler_params=pltpu.CompilerParams(
            dimension_semantics=("parallel", "arbitrary"),
            vmem_limit_bytes=vmem_limit),
    )(alpha_arr, tgt2d, logits_p, sup_mm)

    # Glue: combine the per-core slabs and take the batch mean (unpadded B).
    loss = jnp.sum(loss_parts) / B
    upd_delta = jnp.sum(upd_parts, axis=0)
    cnt_delta = jnp.sum(cnt_parts, axis=(0, 1))
    return loss, upd_delta, cnt_delta


def _reference(logits, target, supervise, alpha):
    """Pure-JAX reference mirroring the PyTorch forward() + step()."""
    logp = jax.nn.log_softmax(logits.astype(jnp.float32), axis=-1)
    probs = jnp.exp(logp)
    true_dist = supervise[:, target].swapaxes(-1, -2)        # (B, C)
    soft = jnp.mean(jnp.sum(-true_dist * logp, axis=-1))
    hard = jnp.mean(-jnp.take_along_axis(logp, target[:, None], axis=-1))
    loss = alpha * hard + (1.0 - alpha) * soft

    y_h = jnp.argmax(probs, axis=-1)
    correct = (y_h == target).astype(jnp.float32)
    onehot = jax.nn.one_hot(target, supervise.shape[0], dtype=jnp.float32)
    upd = probs.T @ (onehot * correct[:, None])
    cnt = jnp.sum(onehot * correct[:, None], axis=0)
    return loss, upd, cnt


if __name__ == "__main__":
    B, C = 40, 10
    alpha, smoothing = 0.5, 0.1

    # Deterministic "buffer" init exactly as the module's __init__ does.
    supervise = jnp.full((C, C), smoothing / (C - 1), dtype=jnp.float32)
    supervise = supervise.at[jnp.arange(C), jnp.arange(C)].set(1.0 - smoothing)

    key = jax.random.PRNGKey(0)
    k1, k2 = jax.random.split(key)
    logits = jax.random.normal(k1, (B, C), dtype=jnp.float32)
    target = jax.random.randint(k2, (B,), 0, C, dtype=jnp.int32)

    # block_b=16 forces a multi-step grid (2 core slabs x 2 batch tiles, with
    # padded rows) so accumulator, padding and megacore-split paths are exercised.
    loss, upd_delta, cnt_delta = online_label_smoothing_forward(
        logits, target, supervise, alpha, block_b=16, num_core_splits=2)
    jax.block_until_ready((loss, upd_delta, cnt_delta))

    ref_loss, ref_upd, ref_cnt = _reference(logits, target, supervise, alpha)
    # bf16 MXU operands + approx reciprocal -> ~1e-2 tolerance on loss / upd.
    assert jnp.allclose(loss, ref_loss, rtol=1e-2, atol=1e-2), (loss, ref_loss)
    assert jnp.allclose(upd_delta, ref_upd, rtol=1e-2, atol=1e-2)
    assert jnp.allclose(cnt_delta, ref_cnt, rtol=0, atol=1e-5)

    print("KERNEL_OK")
</pallas_src>

<mosaic_0001>
module attributes {stable_mosaic.version = 11 : i64} {
  func.func @_ols_kernel(%arg0: i32, %arg1: i32, %arg2: memref<1x1xf32, #tpu.memory_space<smem>>, %arg3: memref<16x1xi32, #tpu.memory_space<vmem>>, %arg4: memref<16x10xf32, #tpu.memory_space<vmem>>, %arg5: memref<10x10xbf16, #tpu.memory_space<vmem>>, %arg6: memref<1x1x1xf32, #tpu.memory_space<vmem>>, %arg7: memref<1x10x10xf32, #tpu.memory_space<vmem>>, %arg8: memref<1x1x10xf32, #tpu.memory_space<vmem>>, %arg9: memref<1x1xf32, #tpu.memory_space<vmem>>) attributes {dimension_semantics = [#tpu.dimension_semantics<parallel>, #tpu.dimension_semantics<arbitrary>], iteration_bounds = array<i64: 2, 2>, scalar_prefetch = 0 : i64, scratch_operands = 1 : i64, tpu.core_type = #tpu.core_type<tc>, window_params = [{transform_indices = @transform_0, window_bounds = array<i64: 1, 1>}, {transform_indices = @transform_1, window_bounds = array<i64: 16, 1>}, {transform_indices = @transform_2, window_bounds = array<i64: 16, 10>}, {pipeline_mode = #tpu.pipeline_mode<synchronous>, transform_indices = @transform_3, window_bounds = array<i64: 10, 10>}, {transform_indices = @transform_4, window_bounds = array<i64: 1, 1, 1>}, {transform_indices = @transform_5, window_bounds = array<i64: 1, 10, 10>}, {transform_indices = @transform_6, window_bounds = array<i64: 1, 1, 10>}]} {
    %c0_i32 = arith.constant 0 : i32
    %0 = arith.cmpi eq, %arg1, %c0_i32 : i32
    %1 = arith.extui %0 : i1 to i32
    %c0_i32_0 = arith.constant 0 : i32
    %2 = arith.cmpi ne, %1, %c0_i32_0 : i32
    scf.if %2 {
      %cst_35 = arith.constant 0.000000e+00 : f32
      %78 = vector.broadcast %cst_35 : f32 to vector<1x1xf32>
      %c0_36 = arith.constant 0 : index
      %c0_37 = arith.constant 0 : index
      %79 = vector.load %arg9[%c0_36, %c0_37] : memref<1x1xf32, #tpu.memory_space<vmem>>, vector<1x1xf32>
      tpu.vector_store %arg9[%c0_36, %c0_37], %78 {strides = array<i32>} : memref<1x1xf32, #tpu.memory_space<vmem>>, vector<1x1xf32>,
      %cst_38 = arith.constant 0.000000e+00 : f32
      %80 = vector.broadcast %cst_38 : f32 to vector<10x10xf32>
      %c0_39 = arith.constant 0 : index
      %c0_40 = arith.constant 0 : index
      %c0_41 = arith.constant 0 : index
      %81 = vector.load %arg7[%c0_39, %c0_40, %c0_41] : memref<1x10x10xf32, #tpu.memory_space<vmem>>, vector<1x10x10xf32>
      %82 = vector.shape_cast %81 : vector<1x10x10xf32> to vector<10x10xf32>
      %83 = vector.shape_cast %80 : vector<10x10xf32> to vector<1x10x10xf32>
      tpu.vector_store %arg7[%c0_39, %c0_40, %c0_41], %83 {strides = array<i32>} : memref<1x10x10xf32, #tpu.memory_space<vmem>>, vector<1x10x10xf32>,
      %cst_42 = arith.constant 0.000000e+00 : f32
      %84 = vector.broadcast %cst_42 : f32 to vector<1x10xf32>
      %c0_43 = arith.constant 0 : index
      %c0_44 = arith.constant 0 : index
      %c0_45 = arith.constant 0 : index
      %85 = vector.load %arg8[%c0_43, %c0_44, %c0_45] : memref<1x1x10xf32, #tpu.memory_space<vmem>>, vector<1x1x10xf32>
      %86 = vector.shape_cast %85 : vector<1x1x10xf32> to vector<1x10xf32>
      %87 = vector.shape_cast %84 : vector<1x10xf32> to vector<1x1x10xf32>
      tpu.vector_store %arg8[%c0_43, %c0_44, %c0_45], %87 {strides = array<i32>} : memref<1x1x10xf32, #tpu.memory_space<vmem>>, vector<1x1x10xf32>,
    } else {
    }
    %c0 = arith.constant 0 : index
    %c0_1 = arith.constant 0 : index
    %3 = memref.load %arg2[%c0, %c0_1] : memref<1x1xf32, #tpu.memory_space<smem>>
    %c0_2 = arith.constant 0 : index
    %c0_3 = arith.constant 0 : index
    %4 = vector.load %arg4[%c0_2, %c0_3] : memref<16x10xf32, #tpu.memory_space<vmem>>, vector<16x10xf32>
    %c0_4 = arith.constant 0 : index
    %c0_5 = arith.constant 0 : index
    %5 = vector.load %arg3[%c0_4, %c0_5] : memref<16x1xi32, #tpu.memory_space<vmem>>, vector<16x1xi32>
    %c0_6 = arith.constant 0 : index
    %c0_7 = arith.constant 0 : index
    %6 = vector.load %arg5[%c0_6, %c0_7] : memref<10x10xbf16, #tpu.memory_space<vmem>>, vector<10x10xbf16>
    %7 = tpu.iota {dimensions = array<i32: 1>} : vector<16x10xi32>
    %8 = vector.broadcast %5 : vector<16x1xi32> to vector<16x10xi32>
    %9 = arith.cmpi eq, %7, %8 : vector<16x10xi32>
    %c0_i32_8 = arith.constant 0 : i32
    %10 = vector.broadcast %c0_i32_8 : i32 to vector<16x1xi32>
    %11 = arith.cmpi sge, %5, %10 : vector<16x1xi32>
    %12 = arith.extui %11 : vector<16x1xi1> to vector<16x1xi32>
    %13 = arith.sitofp %12 : vector<16x1xi32> to vector<16x1xf32>
    %cst = arith.constant dense<0xFF800000> : vector<16xf32>
    %14 = vector.multi_reduction <maximumf>, %4, %cst [1] : vector<16x10xf32> to vector<16xf32>
    %15 = vector.shape_cast %14 : vector<16xf32> to vector<16x1xf32>
    %16 = vector.broadcast %15 : vector<16x1xf32> to vector<16x10xf32>
    %17 = arith.subf %4, %16 : vector<16x10xf32>
    %18 = math.exp %17 : vector<16x10xf32>
    %cst_9 = arith.constant dense<0.000000e+00> : vector<16xf32>
    %19 = vector.multi_reduction <add>, %18, %cst_9 [1] : vector<16x10xf32> to vector<16xf32>
    %20 = vector.shape_cast %19 : vector<16xf32> to vector<16x1xf32>
    %21 = math.log %20 : vector<16x1xf32>
    %22 = arith.addf %15, %21 : vector<16x1xf32>
    %23 = tpu.reciprocal %20 {approx = true} : vector<16x1xf32> -> vector<16x1xf32>
    %24 = vector.broadcast %23 : vector<16x1xf32> to vector<16x10xf32>
    %25 = arith.mulf %18, %24 : vector<16x10xf32>
    %26 = arith.truncf %25 : vector<16x10xf32> to vector<16x10xbf16>
    %cst_10 = arith.constant 0.000000e+00 : f32
    %27 = vector.broadcast %cst_10 : f32 to vector<16x10xf32>
    %28 = arith.select %9, %4, %27 : vector<16x10xi1>, vector<16x10xf32>
    %cst_11 = arith.constant dense<0.000000e+00> : vector<16xf32>
    %29 = vector.multi_reduction <add>, %28, %cst_11 [1] : vector<16x10xf32> to vector<16xf32>
    %30 = vector.shape_cast %29 : vector<16xf32> to vector<16x1xf32>
    %31 = arith.extui %9 : vector<16x10xi1> to vector<16x10xi32>
    %32 = arith.sitofp %31 : vector<16x10xi32> to vector<16x10xf32>
    %33 = arith.truncf %32 : vector<16x10xf32> to vector<16x10xbf16>
    %cst_12 = arith.constant dense<0.000000e+00> : vector<16x10xf32>
    %34 = tpu.matmul %33, %6, %cst_12 {dimension_numbers = #tpu.dot_dimension_numbers<[1], [1], [0], [0], [0, 0, 1, 0], [], []>} : vector<16x10xbf16>, vector<10x10xbf16>, vector<16x10xf32> -> vector<16x10xf32>
    %35 = vector.broadcast %22 : vector<16x1xf32> to vector<16x10xf32>
    %36 = arith.subf %35, %4 : vector<16x10xf32>
    %37 = arith.subf %22, %30 : vector<16x1xf32>
    %38 = arith.mulf %13, %37 : vector<16x1xf32>
    %39 = arith.mulf %34, %36 : vector<16x10xf32>
    %cst_13 = arith.constant dense<0.000000e+00> : vector<16xf32>
    %40 = vector.multi_reduction <add>, %39, %cst_13 [1] : vector<16x10xf32> to vector<16xf32>
    %41 = vector.shape_cast %40 : vector<16xf32> to vector<16x1xf32>
    %42 = vector.broadcast %3 : f32 to vector<16x1xf32>
    %43 = arith.mulf %42, %38 : vector<16x1xf32>
    %cst_14 = arith.constant 1.000000e+00 : f32
    %44 = arith.subf %cst_14, %3 : f32
    %45 = vector.broadcast %44 : f32 to vector<16x1xf32>
    %46 = arith.mulf %45, %41 : vector<16x1xf32>
    %47 = arith.addf %43, %46 : vector<16x1xf32>
    %c0_15 = arith.constant 0 : index
    %c0_16 = arith.constant 0 : index
    %48 = vector.load %arg9[%c0_15, %c0_16] : memref<1x1xf32, #tpu.memory_space<vmem>>, vector<1x1xf32>
    %cst_17 = arith.constant dense<0.000000e+00> : vector<1xf32>
    %49 = vector.multi_reduction <add>, %47, %cst_17 [0] : vector<16x1xf32> to vector<1xf32>
    %50 = vector.shape_cast %49 : vector<1xf32> to vector<1x1xf32>
    %51 = arith.addf %48, %50 : vector<1x1xf32>
    %c0_18 = arith.constant 0 : index
    %c0_19 = arith.constant 0 : index
    %52 = vector.load %arg9[%c0_18, %c0_19] : memref<1x1xf32, #tpu.memory_space<vmem>>, vector<1x1xf32>
    tpu.vector_store %arg9[%c0_18, %c0_19], %51 {strides = array<i32>} : memref<1x1xf32, #tpu.memory_space<vmem>>, vector<1x1xf32>,
    %53 = arith.cmpf oge, %30, %15 : vector<16x1xf32>
    %54 = arith.extui %53 : vector<16x1xi1> to vector<16x1xi32>
    %55 = arith.sitofp %54 : vector<16x1xi32> to vector<16x1xf32>
    %56 = arith.truncf %55 : vector<16x1xf32> to vector<16x1xbf16>
    %57 = vector.broadcast %56 : vector<16x1xbf16> to vector<16x10xbf16>
    %58 = arith.mulf %33, %57 : vector<16x10xbf16>
    %c0_20 = arith.constant 0 : index
    %c0_21 = arith.constant 0 : index
    %c0_22 = arith.constant 0 : index
    %59 = vector.load %arg7[%c0_20, %c0_21, %c0_22] : memref<1x10x10xf32, #tpu.memory_space<vmem>>, vector<1x10x10xf32>
    %60 = vector.shape_cast %59 : vector<1x10x10xf32> to vector<10x10xf32>
    %cst_23 = arith.constant dense<0.000000e+00> : vector<10x10xf32>
    %61 = tpu.matmul %26, %58, %cst_23 {dimension_numbers = #tpu.dot_dimension_numbers<[0], [0], [1], [1], [0, 1, 1, 1], [], []>} : vector<16x10xbf16>, vector<16x10xbf16>, vector<10x10xf32> -> vector<10x10xf32>
    %62 = arith.addf %60, %61 : vector<10x10xf32>
    %c0_24 = arith.constant 0 : index
    %c0_25 = arith.constant 0 : index
    %c0_26 = arith.constant 0 : index
    %63 = vector.load %arg7[%c0_24, %c0_25, %c0_26] : memref<1x10x10xf32, #tpu.memory_space<vmem>>, vector<1x10x10xf32>
    %64 = vector.shape_cast %63 : vector<1x10x10xf32> to vector<10x10xf32>
    %65 = vector.shape_cast %62 : vector<10x10xf32> to vector<1x10x10xf32>
    tpu.vector_store %arg7[%c0_24, %c0_25, %c0_26], %65 {strides = array<i32>} : memref<1x10x10xf32, #tpu.memory_space<vmem>>, vector<1x10x10xf32>,
    %c0_27 = arith.constant 0 : index
    %c0_28 = arith.constant 0 : index
    %c0_29 = arith.constant 0 : index
    %66 = vector.load %arg8[%c0_27, %c0_28, %c0_29] : memref<1x1x10xf32, #tpu.memory_space<vmem>>, vector<1x1x10xf32>
    %67 = vector.shape_cast %66 : vector<1x1x10xf32> to vector<1x10xf32>
    %68 = arith.extf %58 : vector<16x10xbf16> to vector<16x10xf32>
    %cst_30 = arith.constant dense<0.000000e+00> : vector<10xf32>
    %69 = vector.multi_reduction <add>, %68, %cst_30 [0] : vector<16x10xf32> to vector<10xf32>
    %70 = vector.shape_cast %69 : vector<10xf32> to vector<1x10xf32>
    %71 = arith.addf %67, %70 : vector<1x10xf32>
    %c0_31 = arith.constant 0 : index
    %c0_32 = arith.constant 0 : index
    %c0_33 = arith.constant 0 : index
    %72 = vector.load %arg8[%c0_31, %c0_32, %c0_33] : memref<1x1x10xf32, #tpu.memory_space<vmem>>, vector<1x1x10xf32>
    %73 = vector.shape_cast %72 : vector<1x1x10xf32> to vector<1x10xf32>
    %74 = vector.shape_cast %71 : vector<1x10xf32> to vector<1x1x10xf32>
    tpu.vector_store %arg8[%c0_31, %c0_32, %c0_33], %74 {strides = array<i32>} : memref<1x1x10xf32, #tpu.memory_space<vmem>>, vector<1x1x10xf32>,
    %c1_i32 = arith.constant 1 : i32
    %75 = arith.cmpi eq, %arg1, %c1_i32 : i32
    %76 = arith.extui %75 : i1 to i32
    %c0_i32_34 = arith.constant 0 : i32
    %77 = arith.cmpi ne, %76, %c0_i32_34 : i32
    scf.if %77 {
      %c0_35 = arith.constant 0 : index
      %c0_36 = arith.constant 0 : index
      %78 = vector.load %arg9[%c0_35, %c0_36] : memref<1x1xf32, #tpu.memory_space<vmem>>, vector<1x1xf32>
      %c0_37 = arith.constant 0 : index
      %c0_38 = arith.constant 0 : index
      %c0_39 = arith.constant 0 : index
      %79 = vector.load %arg6[%c0_37, %c0_38, %c0_39] : memref<1x1x1xf32, #tpu.memory_space<vmem>>, vector<1x1x1xf32>
      %80 = vector.shape_cast %79 : vector<1x1x1xf32> to vector<1x1xf32>
      %81 = vector.shape_cast %78 : vector<1x1xf32> to vector<1x1x1xf32>
      tpu.vector_store %arg6[%c0_37, %c0_38, %c0_39], %81 {strides = array<i32>} : memref<1x1x1xf32, #tpu.memory_space<vmem>>, vector<1x1x1xf32>,
    } else {
    }
    return
  }
  func.func @transform_0(%arg0: i32, %arg1: i32) -> (i32, i32) {
    %c0_i32 = arith.constant 0 : i32
    %c0_i32_0 = arith.constant 0 : i32
    %c0_i32_1 = arith.constant 0 : i32
    return %c0_i32, %c0_i32_0 : i32, i32
  }
  func.func @transform_1(%arg0: i32, %arg1: i32) -> (i32, i32) {
    %c2_i32 = arith.constant 2 : i32
    %0 = arith.muli %arg0, %c2_i32 : i32
    %1 = arith.addi %0, %arg1 : i32
    %c0_i32 = arith.constant 0 : i32
    %c0_i32_0 = arith.constant 0 : i32
    return %1, %c0_i32 : i32, i32
  }
  func.func @transform_2(%arg0: i32, %arg1: i32) -> (i32, i32) {
    %c2_i32 = arith.constant 2 : i32
    %0 = arith.muli %arg0, %c2_i32 : i32
    %1 = arith.addi %0, %arg1 : i32
    %c0_i32 = arith.constant 0 : i32
    %c0_i32_0 = arith.constant 0 : i32
    return %1, %c0_i32 : i32, i32
  }
  func.func @transform_3(%arg0: i32, %arg1: i32) -> (i32, i32) {
    %c0_i32 = arith.constant 0 : i32
    %c0_i32_0 = arith.constant 0 : i32
    %c0_i32_1 = arith.constant 0 : i32
    return %c0_i32, %c0_i32_0 : i32, i32
  }
  func.func @transform_4(%arg0: i32, %arg1: i32) -> (i32, i32, i32) {
    %c0_i32 = arith.constant 0 : i32
    %c0_i32_0 = arith.constant 0 : i32
    %c0_i32_1 = arith.constant 0 : i32
    return %arg0, %c0_i32, %c0_i32_0 : i32, i32, i32
  }
  func.func @transform_5(%arg0: i32, %arg1: i32) -> (i32, i32, i32) {
    %c0_i32 = arith.constant 0 : i32
    %c0_i32_0 = arith.constant 0 : i32
    %c0_i32_1 = arith.constant 0 : i32
    return %arg0, %c0_i32, %c0_i32_0 : i32, i32, i32
  }
  func.func @transform_6(%arg0: i32, %arg1: i32) -> (i32, i32, i32) {
    %c0_i32 = arith.constant 0 : i32
    %c0_i32_0 = arith.constant 0 : i32
    %c0_i32_1 = arith.constant 0 : i32
    return %arg0, %c0_i32, %c0_i32_0 : i32, i32, i32
  }
}

</mosaic_0001>

<bundles_post_ra>
// kernel: tpu_custom_call.1
= control target key start
LH: loop header
LB: loop body
LE: loop exit
PB: predicated region body
PF: predicated region fallthrough
CT: control target
= control target key end

     0   :  { %s1237_s0 = inlined_call_operand.<no memory space> [shape: f32[1,1], index: 0, kind: input, shape index: {}]   ;;  %s1238_s1 = inlined_call_operand.vmem [shape: s32[64,1], index: 1, kind: input, shape index: {}]   ;;  %s1239_s2 = inlined_call_operand.vmem [shape: f32[64,10], index: 2, kind: input, shape index: {}]   ;;  %s1240_s3 = inlined_call_operand.vmem [shape: bf16[10,10], index: 3, kind: input, shape index: {}]   ;;  %s1241_s4 = inlined_call_operand.vmem [shape: f32[2,1,1], index: 4, kind: output, shape index: {0}]   ;;  %s1242_s5 = inlined_call_operand.vmem [shape: f32[2,10,10], index: 5, kind: output, shape index: {1}]   ;;  %s1243_s6 = inlined_call_operand.hbm [shape: f32[2,1,10], index: 6, kind: output, shape index: {2}]  }
   0x1   :  { %12 = sst [smem:[#allocation3]] %s1237_s0 }
   0x2   :  { %13 = vsyncpa [#allocation5], 0 }
   0x3   :  { %15 = vsyncpa [#allocation5 + $0x1], 0  ;;  %s1024_s23 = smov 0   ;;  %s1026_s24 = smov 0  }
   0x4   :  { %s1028_s25 = smov 0   ;;  %s1030_s26 = smov 0  }
   0x5   :  { %s1032_s27 = smov 0   ;;  %s1034_s28 = smov 0  }
   0x6   :  { %s1036_s29 = smov 0   ;;  %s1038_s30 = smov 0  }
   0x7 LB: > { %1248 = sst [smem:[#allocation7_spill]] %s959_s25  ;;  %s749_s0 = sadd.s32 4294967295, %s979_s30   ;;  %s979_s30 = sphi %s1038_s30, %s21_s30   ;;  %s975_s29 = sphi %s1036_s29, %s1263_s29   ;;  %s971_s28 = sphi %s1034_s28, %s1262_s28   ;;  %s967_s27 = sphi %s1032_s27, %s1261_s27   ;;  %s963_s26 = sphi %s1030_s26, %s1260_s26   ;;  %s959_s25 = sphi %s1028_s25, %s1259_s25   ;;  %s955_s24 = sphi %s1026_s24, %s1265_s24   ;;  %s951_s23 = sphi %s1024_s23, %s1264_s23  }
   0x8   : > { %1249 = sst [smem:[#allocation8_spill]] %s971_s28  ;;  %s750_s7 = sadd.s32 4294967294, %s979_s30  }
   0x9   : > { %1250 = sst [smem:[#allocation9_spill]] %s975_s29  ;;  %s30_s8 = sadd.s32 1, %s971_s28 }
   0xa   : > { %p31_p0 = scmp.ge.s32.totalorder %s30_s8, 2  ;;  %s33_s9 = sadd.s32 1, %s975_s29 }
   0xb   : > { %p204_p1 = scmp.ne.s32.totalorder %s959_s25, %s955_s24  ;;  %p205_p2 = scmp.eq.s32.totalorder %s749_s0, 3 }
   0xc   : > { %s1267_s8 = smov (%p31_p0, %s30_s8), 0  ;;  %s1269_s9 = smov (!%p31_p0, %s33_s9), %s975_s29 }
   0xd   : > { %1251 = sst [smem:[#allocation10_spill]] %s1267_s8  ;;  %p1073_p3 = por %p205_p2, %p204_p1 }
   0xe   : > { %p210_p4 = scmp.ne.s32.totalorder %s955_s24, %s951_s23  ;;  %p35_p5 = scmp.ge.s32.totalorder %s1269_s9, 2 }
   0xf   : > { %p211_p6 = scmp.eq.s32.totalorder %s750_s7, 3  ;;  %p757_p7 = scmp.ge.s32.totalorder %s979_s30, 1 }
  0x10   : > { %p261_p8 = scmp.lt.s32.totalorder %s979_s30, 5  ;;  %s1271_s9 = smov (%p35_p5, %s1269_s9), 0 }
  0x11   : > { %1253 = sst [smem:[#allocation11_spill]] %s1271_s9  ;;  %p1083_p9 = por %p211_p6, %p210_p4 }
  0x12   : > { %p262_p10 = pnand %p757_p7, %p261_p8  ;;  %s191_s12 = ssub.s32 %s975_s29, %s1271_s9 }
  0x13   : > { %s194_s13 = sadd.s32 1, %s959_s25  ;;  %p192_p11 = scmp.eq.s32.totalorder %s191_s12, 0 }
  0x14   : > { %265 = sbr.rel (%p262_p10) target bundleno = 688 (0x2b0), region = 36  ;;  %s758_s16 = sshll.u32 (!%p262_p10), %s967_s27, 1 }
  0x15   : > { %s1091_s14 = scalar_select %p192_p11, %s959_s25, %s194_s13  }
  0x16   : > { %s308_s17 = sadd.s32 (!%p262_p10), %s963_s26, %s758_s16  ;;  %p327_p12 = scmp.lt.s32.totalorder (!%p262_p10), %s967_s27, 1 }
  0x17   : > { %1255 = sst [smem:[#allocation12_spill]] %s1091_s14  ;;  %s759_s18 = sshll.u32 (!%p262_p10), %s308_s17, 1 }
  0x18   : > { %p310_p13 = scmp.lt.s32.totalorder (!%p262_p10), %s759_s18, 7  ;;  %s1256_s14 = sand.u32 (!%p262_p10), 1, %s955_s24  }
  0x19   : > { %s1098_s19 = scalar_select %p327_p12, %s967_s27, 1 }
  0x1a   : > { %s1273_s18 = smov (!%p310_p13, %s759_s18), 7  ;;  %s1118_s25 = scalar_lea.vmem [#allocation4], %s1256_s14 }
  0x1b   : > { %s329_s22 = scalar_lea.vmem %s1241_s4, %s1098_s19  ;;  %s780_s0 = sshll.u32 %s1098_s19, 4 }
  0x1c   : > { %s760_s7 = sshll.u32 %s1273_s18, 3  ;;  %s1108_s15 = scalar_lea.vmem %s1242_s5, %s780_s0 }
  0x1d   : > { %s313_s9 = scalar_lea.vmem %s1238_s1, %s760_s7  ;;  %s323_s28 = scalar_lea.vmem %s1239_s2, %s760_s7 }
  0x1e   : > { %p766_p0 = scmp.ne.s32.totalorder %s963_s26, 0 }
  0x20   : > { %339 = sbr.rel (%p766_p0) target bundleno = 42 (0x2a), region = 40 }
  0x25   : > { %vm340_vm0 = vcmask 0   ;;  %vm342_vm1 = vcmask 80896   ;;  %vm344_vm2 = vcmask 74752   ;;  %v981_v0 = vmov 0.0  }
  0x26   : > { %341 = vst.msk [vmem:[#allocation2] sm:$0x1] %vm340_vm0, %v981_v0  ;;  %vm346_vm3 = vcmask 73728  }
  0x27   : > { %343 = vst.msk [vmem:[%s1108_s15] sm:$0xff] %vm342_vm1, %v981_v0 }
  0x28   : > { %345 = vst.msk [vmem:[%s1108_s15 + $0x8] sm:$0x3] %vm344_vm2, %v981_v0 }
  0x29   : > { %347 = vst.msk [vmem:[%s1118_s25] sm:$0x1] %vm346_vm3, %v981_v0 }
  0x2a PF: > { %v1124_v1 = vld [vmem:[%s313_s9] sm:$0xff]  ;;  %vm371_vm4 = vcmask 80896   ;;  %v982_v3 = vmov 0   ;;  %v1131_v5 = vld [vmem:[%s323_s28 + $0x8] sm:$0xff]  ;;  %v983_v6 = vmov 0.0   ;;  %vm984_vm5 = vmmov 0  }
  0x2b   : > { %v1126_v2 = vld [vmem:[%s323_s28] sm:$0xff]  ;;  %872 = vset.pattern.permute.xlu1 %v982_v3  ;;  %785 = vmatprep.subr.bf16.mxu0 %v983_v6  ;;  %v1135_v7 = vld [vmem:[%s313_s9 + $0x8] sm:$0xff]  ;;  %v375_v8 = vsel %vm371_vm4, %v1131_v5, -inf  ;;  %v355_v11 = vlaneseq  ;;  %vm365_vm10 = vcmp.ge.s32.totalorder %v1124_v1, 0  ;;  %vm592_vm12 = vcmask 73728   ;;  %s348_s28 = sld [smem:[#allocation3]] }
  0x2c   : > { %v372_v4 = vsel %vm371_vm4, %v1126_v2, -inf  ;;  %358 = vperm.xlu1 %872, %v1124_v1   ;;  %v874_v9 = vld [vmem:[%s1240_s3] sm:$0x1f]   ;;  %791 = vmatprep.subr.bf16.mxu1 %v983_v6  ;;  %v767_v49 = vsel %vm365_vm10, 1.0, %v983_v6  ;;  %vm366_vm11 = vcmp.ge.s32.totalorder %v1135_v7, 0  ;;  %vm529_vm13 = vcmask 130048  }
  0x2d   : > { %373 = vmax.xlane.f32.xlu0 %v372_v4  ;;  %v423_v10 = vsel %vm371_vm4, %v874_v9, 0  ;;  %787 = vmatprep.mubr.msk.bf16.mxu0 %vm984_vm5, %v983_v6  ;;  %v356_v12 = vand.u32 127, %v355_v11  ;;  %v768_v59 = vsel %vm366_vm11, 1.0, %v983_v6  ;;  %vm490_vm14 = vcmask 7168   ;;  %p776_p1 = scmp.ne.s32.totalorder %s963_s26, 1 }
  0x2e   : > { %793 = vmatprep.mubr.msk.bf16.mxu1 %vm984_vm5, %v983_v6  ;;  %786 = vmatpush3.bf16.xpose.msra.mxu0 %v423_v10  ;;  %vm501_vm15 = vcmask 0   ;;  %vm577_vm0 = vcmask 74752  }
  0x30   : > { %361 = vperm.xlu1 %872, %v1135_v7   ;;  %v579_v7 = vld [vmem:[%s1118_s25] sm:$0x1] }
  0x31   : > { %376 = vmax.xlane.f32.xlu0 %v375_v8  ;;  %s483_s9 = ssub.f32 1.0, %s348_s28 }
  0xa7   : > { %v359_v13 = vpop.permute.xlu1 %358 }
  0xa8   : > { %vm363_vm6 = vcmp.eq.s32.totalorder %v356_v12, %v359_v13 }
  0xa9   : > { %v769_v14 = vsel %vm363_vm6, 1.0, %v983_v6  ;;  %v401_v25 = vsel %vm363_vm6, %v1126_v2, 0.0 }
  0xaa   : > { %v403_v27 = vsel %vm371_vm4, %v401_v25, 0.0 }
  0xab   : > { %v362_v15 = vpop.permute.xlu1 %361 }
  0xac   : > { %vm364_vm7 = vcmp.eq.s32.totalorder %v356_v12, %v362_v15 }
  0xad   : > { %v770_v16 = vsel %vm364_vm7, 1.0, %v983_v6  ;;  %v402_v29 = vsel %vm364_vm7, %v1131_v5, 0.0 }
  0xae   : > { %v413_v17 = vpack.c.bf16 %v770_v16, %v769_v14  ;;  %v406_v31 = vsel %vm371_vm4, %v402_v29, 0.0 }
  0xb0   : > { %788 = vmatmul.mubr.msk.bf16.vlgmr.msra.gmra.mxu0 %vm371_vm4, %v413_v17 }
  0xb6   : > { %v374_v18 = vpop.xlane.xlu0 %373 }
  0xb7   : > { %v378_v19 = vsub.f32 %v1126_v2, %v374_v18 }
  0xb9   : > { %v380_v20 = vmul.f32 1.442695, %v378_v19  ;;  %v484_v19 = vstv %s483_s9 }
  0xba   : > { %v377_v21 = vpop.xlane.xlu0 %376 }
  0xbb   : > { %875 = vpow2.f32 %v380_v20  ;;  %v379_v22 = vsub.f32 %v1131_v5, %v377_v21 }
  0xbd   : > { %v382_v23 = vmul.f32 1.442695, %v379_v22 }
  0xbf   : > { %877 = vpow2.f32 %v382_v23 }
  0xc8   : > { %v876_v24 = vpop.eup %875 }
  0xc9   : > { %v384_v26 = vsel %vm371_vm4, %v876_v24, 0.0 }
  0xca   : > { %385 = vadd.xlane.f32.xlu0 %v384_v26 }
  0xcc   : > { %v878_v28 = vpop.eup %877 }
  0xcd   : > { %v387_v30 = vsel %vm371_vm4, %v878_v28, 0.0 }
  0xce   : > { %404 = vadd.xlane.f32.xlu0 %v403_v27  ;;  %388 = vadd.xlane.f32.xlu1 %v387_v30 }
  0xd2   : > { %407 = vadd.xlane.f32.xlu0 %v406_v31 }
 0x153   : > { %v386_v32 = vpop.xlane.xlu0 %385 }
 0x154   : > { %879 = vlog2.f32 %v386_v32 }
 0x155   : > { %881 = vrcp.f32 %v386_v32 }
 0x157   : > { %v389_v33 = vpop.xlane.xlu1 %388  ;;  %v405_v34 = vpop.xlane.xlu0 %404 }
 0x158   : > { %883 = vlog2.f32 %v389_v33  ;;  %vm503_vm8 = vcmp.ge.f32.partialorder %v405_v34, %v374_v18 }
 0x159   : > { %885 = vrcp.f32 %v389_v33  ;;  %v773_v36 = vsel %vm503_vm8, 1.0, %v983_v6 }
 0x15b   : > { %v408_v35 = vpop.xlane.xlu0 %407 }
 0x15c   : > { %vm504_vm9 = vcmp.ge.f32.partialorder %v408_v35, %v377_v21 }
 0x15d   : > { %v774_v37 = vsel %vm504_vm9, 1.0, %v983_v6 }
 0x15e   : > { %v509_v38 = vpack.c.bf16 %v774_v37, %v773_v36 }
 0x160   : > { %v510_v39 = vmul.bf16 %v509_v38, %v413_v17  ;;  %v511_v38 = vld [vmem:[%s1108_s15] sm:$0xff] }
 0x161   : > { %v880_v40 = vpop.eup %879 }
 0x162   : > { %v391_v41 = vmul.f32 0.6931472, %v880_v40  ;;  %792 = vmatpush3.bf16.msra.mxu1 %v510_v39  ;;  %v580_v42 = vunpack.c.l.bf16 %v510_v39  ;;  %v581_v43 = vunpack.c.h.bf16 %v510_v39  ;;  %v882_v44 = vpop.eup %881 }
 0x163   : > { %v398_v55 = vmul.f32 %v882_v44, %v876_v24 }
 0x164   : > { %v394_v45 = vadd.f32 %v391_v41, %v374_v18  ;;  %v582_v46 = vsel %vm371_vm4, %v580_v42, 0.0  ;;  %v583_v47 = vsel %vm371_vm4, %v581_v43, 0.0  ;;  %v512_v42 = vld [vmem:[%s1108_s15 + $0x8] sm:$0x3] }
 0x165   : > { %v884_v48 = vpop.eup %883  ;;  %v584_v50 = vadd.f32 %v583_v47, %v582_v46 }
 0x166   : > { %v886_v51 = vpop.eup %885  ;;  %v393_v52 = vmul.f32 0.6931472, %v884_v48  ;;  %v468_v53 = vsub.f32 %v394_v45, %v405_v34  ;;  %v466_v8 = vsub.f32 %v394_v45, %v1126_v2 }
 0x167   : > { %v585_v54 = vrot.slane %v584_v50, 4  ;;  %v399_v56 = vmul.f32 %v886_v51, %v878_v28 }
 0x168   : > { %v470_v57 = vmul.f32 %v767_v49, %v468_v53  ;;  %v395_v58 = vadd.f32 %v393_v52, %v377_v21 }
 0x169   : > { %v586_v60 = vadd.f32 %v585_v54, %v584_v50  ;;  %v400_v61 = vpack.c.bf16 %v399_v56, %v398_v55 }
 0x16a   : > { %v469_v62 = vsub.f32 %v395_v58, %v408_v35  ;;  %v467_v6 = vsub.f32 %v395_v58, %v1131_v5  ;;  %v480_v5 = vstv %s348_s28  ;;  %v489_v35 = vld [vmem:[#allocation2] sm:$0x1] }
 0x16b   : > { %v587_v63 = vrot.slane %v586_v60, 2  ;;  %513 = vxpose.xlu0.c.b16.start.end [1/1] (short) (narrow) %v400_v61, 16  ;;  %v481_v22 = vmul.f32 %v480_v5, %v470_v57 }
 0x16c   : > { %v471_v0 = vmul.f32 %v768_v59, %v469_v62 }
 0x16d   : > { %v588_v1 = vadd.f32 %v587_v63, %v586_v60 }
 0x16e   : > { %v482_v24 = vmul.f32 %v480_v5, %v471_v0 }
 0x16f   : > { %v589_v4 = vrot.slane %v588_v1, 1 }
 0x170   : > { %v459_v10 = vpop.f32.mrf.mxu0 }
 0x171   : > { %v590_v9 = vadd.f32 %v589_v4, %v588_v1  ;;  %v472_v11 = vmul.f32 %v466_v8, %v459_v10 }
 0x172   : > { %v789_v13 = vpop.f32.mrf.mxu0 }
 0x173   : > { %v591_v12 = vadd.f32 %v590_v9, %v579_v7  ;;  %v474_v14 = vsel %vm371_vm4, %v472_v11, 0.0 }
 0x174   : > { %873 = vset.pattern.permute.xlu0 %v982_v3  ;;  %v462_v15 = vpop.f32.mrf.mxu0  ;;  %475 = vadd.xlane.f32.xlu1 %v474_v14 }
 0x175   : > { %593 = vst.msk [vmem:[%s1118_s25] sm:$0x1] %vm592_vm12, %v591_v12  ;;  %v473_v16 = vmul.f32 %v467_v6, %v462_v15 }
 0x176   : > { %v790_v17 = vpop.f32.mrf.mxu0 }
 0x177   : > { %v477_v18 = vsel %vm371_vm4, %v473_v16, 0.0 }
 0x178   : > { %478 = vadd.xlane.f32.xlu1 %v477_v18 }
 0x1cd   : > { %v521_v2 = vpop.trf.xlu0 }
 0x1ce   : > { %794 = vmatmul.mubr.msk.bf16.vlgmr.msra.gmra.mxu1 %vm529_vm13, %v521_v2 }
 0x1fd   : > { %v476_v20 = vpop.xlane.xlu1 %475 }
 0x1fe   : > { %v485_v21 = vmul.f32 %v484_v19, %v476_v20 }
 0x200   : > { %v487_v3 = vadd.f32 %v485_v21, %v481_v22 }
 0x201   : > { %v479_v23 = vpop.xlane.xlu1 %478 }
 0x202   : > { %v486_v25 = vmul.f32 %v484_v19, %v479_v23  ;;  %v491_v27 = vsel %vm490_vm14, %v487_v3, 0.0 }
 0x204   : > { %v488_v26 = vadd.f32 %v486_v25, %v482_v24 }
 0x206   : > { %v492_v28 = vsel %vm490_vm14, %v488_v26, 0.0 }
 0x207   : > { %v493_v29 = vadd.f32 %v492_v28, %v491_v27 }
 0x209   : > { %v494_v30 = vrot.slane %v493_v29, 4 }
 0x20b   : > { %v495_v31 = vadd.f32 %v494_v30, %v493_v29 }
 0x20d   : > { %v496_v32 = vrot.slane %v495_v31, 2 }
 0x20f   : > { %v497_v33 = vadd.f32 %v496_v32, %v495_v31 }
 0x211   : > { %v498_v34 = vrot.slane %v497_v33, 1 }
 0x213   : > { %v499_v36 = vadd.f32 %v498_v34, %v497_v33 }
 0x215   : > { %v500_v37 = vadd.f32 %v499_v36, %v489_v35 }
 0x217   : > { %502 = vst.msk [vmem:[#allocation2] sm:$0x1] %vm501_vm15, %v500_v37 }
 0x28e   : > { %v567_v39 = vpop.f32.mrf.mxu1 }
 0x28f   : > { %v574_v40 = vadd.f32 %v567_v39, %v511_v38 }
 0x290   : > { %v795_v41 = vpop.f32.mrf.mxu1 }
 0x291   : > { %576 = vst.msk [vmem:[%s1108_s15] sm:$0xff] %vm371_vm4, %v574_v40  ;;  %597 = sbr.rel (%p776_p1) target bundleno = 664 (0x298), region = 44 }
 0x292   : > { %v570_v43 = vpop.f32.mrf.mxu1 }
 0x293   : > { %v575_v44 = vadd.f32 %v570_v43, %v512_v42 }
 0x294   : > { %v796_v45 = vpop.f32.mrf.mxu1 }
 0x295   : > { %578 = vst.msk [vmem:[%s1108_s15 + $0x8] sm:$0x3] %vm577_vm0, %v575_v44 }
 0x296   : > { %v598_v46 = vld [vmem:[#allocation2] sm:$0x1] }
 0x297   : > { %599 = vst.msk [vmem:[%s329_s22] sm:$0x1] %vm501_vm15, %v598_v46 }
 0x298 PF: > { %s777_s20 = sshll.u32 %s967_s27, 4  ;;  %s627_s26 = sshll.u32 %s1118_s25, 4  ;;  %s628_s26 = int_to_ptr.vmem [resolvable:$true] %s627_s26 }
 0x299   : > { %s625_s15 = scalar_lea.hbm %s1243_s6, %s777_s20  ;;  %s1257_s7 = sand.u32 1, %s955_s24  }
 0x29a   : > { %s609_s12 = scalar_lea.sflag [#allocation5], %s1257_s7  ;;  %s887_s13 = scalar_lea.vmem %s628_s26, 16 }
 0x29b   : > { %p888_p2 = scmp.ne.s32.totalorder %s628_s26, %s887_s13  ;;  %s985_s19 = smov [#allocation4]  }
 0x29c   : > { %s891_s22 = sshll.u32 %s985_s19, 4  ;;  %s892_s22 = int_to_ptr.vmem [resolvable:$false] %s891_s22 }
 0x29d   : > { %p889_p4 = pnand %p888_p2, %p1073_p3  ;;  %s893_s16 = scalar_lea.vmem %s892_s22, 32 }
 0x29e   : > { %p894_p6 = scmp.lt.s32.totalorder %s628_s26, %s892_s22  ;;  %p895_p7 = scmp.lt.s32.totalorder %s893_s16, %s887_s13 }
 0x29f   : > { %p890_p5 = pneg %p889_p4 }
 0x2a0   : > { %p896_p8 = por %p895_p7, %p894_p6 }
 0x2a2   : > { %p897_p10 = pnand %p896_p8, %p890_p5 }
 0x2a4   : > { %900 = shalt.err (!%p897_p10)
}
 0x2a5   : > { %s901_s27 = scalar_lea.hbm %s625_s15, 16  ;;  %s905_s29 = scalar_lea.hbm %s1243_s6, 32 }
 0x2a6   : > { %p902_p11 = scmp.ne.s32.totalorder %s625_s15, %s901_s27  ;;  %p906_p0 = scmp.lt.s32.totalorder %s625_s15, %s1243_s6 }
 0x2a7   : > { %p907_p1 = scmp.lt.s32.totalorder %s905_s29, %s901_s27 }
 0x2a8   : > { %p903_p12 = pnand %p902_p11, %p1073_p3 }
 0x2a9   : > { %p908_p2 = por %p907_p1, %p906_p0 }
 0x2aa   : > { %p904_p13 = pneg %p903_p12 }
 0x2ac   : > { %p909_p4 = pnand %p908_p2, %p904_p13 }
 0x2ae   : > { %912 = shalt.err (!%p909_p4)
}
 0x2af   : > { %797 = dma.vmem_to_hbm [thread:$0]  (%p1073_p3), %s628_s26, 16, %s625_s15, %s609_s12  }
 0x2b0 PF: > { %p803_p5 = scmp.ge.s32.totalorder %s979_s30, 2  ;;  %s653_s9 = sand.u32 1, %s951_s23  }
 0x2b1   : > { %s654_s14 = scalar_lea.sflag [#allocation5], %s653_s9 }
 0x2b2   : > { %p800_p6 = pnand %p803_p5, %p1083_p9 }
 0x2b4   : > { %p801_p7 = pneg %p800_p6 }
 0x2b6   : > { %946 = dma.done.wait (%p801_p7), %s654_s14, 16  }
 0x2b7   : > { %948 = vsyncadd (%p801_p7), %s654_s14, 4294967280  ;;  %s21_s30 = sadd.s32 1, %s979_s30   ;;  %s1258_s18 = sld [smem:[#allocation7_spill]] }
 0x2b8   : > { %p18_p8 = scmp.ge.s32.totalorder %s21_s30, 6   ;;  %s1259_s25 = sld [smem:[#allocation12_spill]] }
 0x2b9   : > { %s1260_s26 = sld [smem:[#allocation8_spill]]  ;;  %s1264_s23 = smov %s955_s24 }
 0x2ba   : > { %s1261_s27 = sld [smem:[#allocation9_spill]]  ;;  %20 = sbr.rel (!%p18_p8) target bundleno = 7 (0x7), region = 106 }
 0x2bb   : > { %s1262_s28 = sld [smem:[#allocation10_spill]] }
 0x2bc   : > { %s1263_s29 = sld [smem:[#allocation11_spill]] }
 0x2bd   : > { %s1265_s24 = smov %s1258_s18 }
 0x2bf   :  { %658 = vsyncpa [#allocation5], 1 }
 0x2c0   :  { %660 = vsyncpa [#allocation5 + $0x1], 1 }

</bundles_post_ra>
